<compile_context>
chip_gen: v5e
topology: v5e:2x2
jax: 0.10.0
libtpu: 0.0.40
codegen_flags: <defaults>
</compile_context>

<pallas_src>
import functools
import math

import jax
import jax.numpy as jnp
from jax import lax
from jax.experimental import pallas as pl
from jax.experimental.pallas import tpu as pltpu


def _round_up(v, m):
    return ((v + m - 1) // m) * m


def _merge_ln_reduce_kernel(x_even_ref, x_odd_ref, w_ref, b_ref, o_ref, *, eps):
    """Fused 2x2 patch merge + LayerNorm(4C) + Linear(4C -> 2C, no bias).

    x_even_ref: (t, Wo, 2C)  rows h = 2*ho     (channels [w0 | w1], C each)
    x_odd_ref:  (t, Wo, 2C)  rows h = 2*ho + 1
    w_ref:      (2, 2C, N)   gamma-folded weight, kernel channel order, (K,N)-major
    b_ref:      (1, N)       beta folded through the weight (f32)
    o_ref:      (t*Wo, N)
    """
    t, wo, two_c = x_even_ref.shape
    rows = t * wo
    inv_k = 1.0 / (2 * two_c)          # 1 / (4*C)

    a0 = x_even_ref[...].reshape(rows, two_c).astype(jnp.float32)
    a1 = x_odd_ref[...].reshape(rows, two_c).astype(jnp.float32)

    # Two-pass LayerNorm statistics over the (virtual) 4C axis, strictly f32.
    mean = (jnp.sum(a0, axis=-1, keepdims=True)
            + jnp.sum(a1, axis=-1, keepdims=True)) * inv_k
    d0 = a0 - mean
    d1 = a1 - mean
    var = (jnp.sum(d0 * d0, axis=-1, keepdims=True)
           + jnp.sum(d1 * d1, axis=-1, keepdims=True)) * inv_k
    inv = lax.rsqrt(var + eps)

    h0 = (d0 * inv).astype(w_ref.dtype)
    h1 = (d1 * inv).astype(w_ref.dtype)

    # x_hat @ W' as two MXU matmuls (no 4C concat), f32 accumulation.
    acc = jnp.dot(h0, w_ref[0], preferred_element_type=jnp.float32)
    acc = acc + jnp.dot(h1, w_ref[1], preferred_element_type=jnp.float32)
    o_ref[...] = (acc + b_ref[...]).astype(o_ref.dtype)


def _vmem_capacity_bytes():
    try:
        return int(pltpu.get_tpu_info().vmem_capacity_bytes)
    except Exception:
        return 64 * 1024 * 1024        # conservative default (v7x-sized VMEM)


def _pick_row_tile(R, Wo, C, in_bytes, out_bytes, mxu_bytes, budget, min_steps):
    """Largest input-row tile whose full VMEM working set fits `budget`."""
    K, N = 4 * C, 2 * C
    wo_p = _round_up(Wo, 8)
    kc_p = _round_up(2 * C, 128)       # lane-padded half-feature width
    n_p = _round_up(N, 128)

    def need(t):
        rows = _round_up(t * Wo, 8)
        inp = 4 * t * wo_p * kc_p * in_bytes        # 2 operands, double-buffered
        outp = 2 * rows * n_p * out_bytes           # double-buffered output
        wgt = 2 * (K * n_p * mxu_bytes + n_p * 4)   # weight + bias
        # in-kernel temporaries: a/d pairs (f32), h pair (mxu dtype), f32 acc
        tmp = rows * 2 * kc_p * (2 * 4 + mxu_bytes) + rows * n_p * 4
        return inp + outp + wgt + tmp

    t = max(1, R)
    while t > 1 and need(t) > budget:
        t = (t + 1) // 2
    while t > 1 and pl.cdiv(R, t) < min_steps:      # v7x: keep both TCs fed
        t = (t + 1) // 2

    if t >= R:
        t = R                                       # single block -> full extent
    else:
        # t*Wo must be a multiple of 8 (output block sublane rule) when t < R.
        q = 8 // math.gcd(Wo, 8)
        t = max(q, (t // q) * q)
        if t >= 8:
            t -= t % 8
        t = min(t, R)
    return t, need(t)


def patch_merging_2d(x, gamma, beta, weight, *, eps=1e-5,
                     mxu_dtype=jnp.bfloat16, out_dtype=None):
    """Forward pass of PatchMerging2D.

    x:      (B, H, W, C)
    gamma:  (4C,)    LayerNorm weight
    beta:   (4C,)    LayerNorm bias
    weight: (2C, 4C) nn.Linear(4*dim, 2*dim, bias=False).weight
    returns (B, H//2, W//2, 2C)
    """
    B, H, W, C = x.shape
    Ho, Wo = H // 2, W // 2
    K, N = 4 * C, 2 * C
    R = B * Ho                        # (batch, output-row) pairs
    M = R * Wo                        # total output pixels
    out_dtype = x.dtype if out_dtype is None else out_dtype

    if H % 2 != 0 or W % 2 != 0:
        # SHAPE_FIX path of the PyTorch module: trim to floor halves.
        x = x[:, : 2 * Ho, : 2 * Wo, :]

    # Free view (no HBM copy): (B,H,W,C) -> (B*Ho, 2, Wo, 2C);
    # dim1 = H parity, last dim = [w-even C channels | w-odd C channels].
    x6 = x.reshape(R, 2, Wo, 2 * C)

    # Fold LayerNorm affine into the reduction weight / bias, and permute the
    # 4C columns from torch order [h0w0,h1w0,h0w1,h1w1] to the kernel's
    # natural order [h0w0,h0w1 | h1w0,h1w1] (permute small weights, not the
    # big activation).
    perm = [0, 2, 1, 3]
    w_f32 = weight.astype(jnp.float32)
    g_perm = gamma.astype(jnp.float32).reshape(4, C)[perm, :].reshape(K)
    w_perm = w_f32.reshape(N, 4, C)[:, perm, :].reshape(N, K)
    w_fold = w_perm * g_perm[None, :]                       # (N, K) f32
    w_stacked = w_fold.T.reshape(2, 2 * C, N).astype(mxu_dtype)   # (2, 2C, N)
    bias = (w_f32 @ beta.astype(jnp.float32)).reshape(1, N)       # (1, N) f32

    in_bytes = jnp.dtype(x.dtype).itemsize
    out_bytes = jnp.dtype(out_dtype).itemsize
    mxu_bytes = jnp.dtype(mxu_dtype).itemsize

    vmem_cap = _vmem_capacity_bytes()
    if vmem_cap <= 64 * 1024 * 1024:
        # v7x-class: 64 MiB VMEM, 2 TensorCores -> tighter budget, >=4 steps.
        budget, min_steps, limit_cap = 36 << 20, 4, 56 << 20
    else:
        # v5e / v6e-class: 128 MiB VMEM, single TensorCore -> big tiles, no floor.
        budget, min_steps, limit_cap = 96 << 20, 1, 110 << 20

    t, vmem_need = _pick_row_tile(R, Wo, C, in_bytes, out_bytes, mxu_bytes,
                                  budget, min_steps)
    grid = (pl.cdiv(R, t),)
    vmem_limit = int(min(max(vmem_need + (8 << 20), 32 << 20), limit_cap))

    kernel = functools.partial(_merge_ln_reduce_kernel, eps=float(eps))

    out2d = pl.pallas_call(
        kernel,
        out_shape=jax.ShapeDtypeStruct((M, N), out_dtype),
        grid_spec=pltpu.PrefetchScalarGridSpec(
            num_scalar_prefetch=0,
            grid=grid,
            in_specs=[
                # Even-H rows (h = 2*ho) and odd-H rows (h = 2*ho + 1) of the
                # same buffer; the squeezed dim-1 index does the parity split
                # inside the input DMA, so no extra HBM round trip.
                pl.BlockSpec((t, None, Wo, 2 * C), lambda i: (i, 0, 0, 0)),
                pl.BlockSpec((t, None, Wo, 2 * C), lambda i: (i, 1, 0, 0)),
                pl.BlockSpec((2, 2 * C, N), lambda i: (0, 0, 0)),
                pl.BlockSpec((1, N), lambda i: (0, 0)),
            ],
            out_specs=pl.BlockSpec((t * Wo, N), lambda i: (i, 0)),
        ),
        compiler_params=pltpu.CompilerParams(
            dimension_semantics=("parallel",),
            vmem_limit_bytes=vmem_limit,
        ),
    )(x6, x6, w_stacked, bias)

    # NOTE: for tiny C (2C < 128) output stores are lane-masked; production
    # dims (C a multiple of 64) give lane-dense stores.  Pass out_dtype=bf16
    # if the consumer allows it to shave ~1/3 of the remaining HBM traffic.
    # TODO(synk): when Wo % 8 != 0 the in-kernel (t,Wo,2C)->(t*Wo,2C) collapse
    # costs a local VMEM relayout copy; a Wo-padded layout would remove it.
    return out2d.reshape(B, Ho, Wo, N)


def _reference(x, gamma, beta, weight, eps=1e-5):
    """Pure-JAX reference matching the PyTorch forward."""
    B, H, W, C = x.shape
    Ho, Wo = H // 2, W // 2
    x0 = x[:, 0::2, 0::2, :][:, :Ho, :Wo, :]
    x1 = x[:, 1::2, 0::2, :][:, :Ho, :Wo, :]
    x2 = x[:, 0::2, 1::2, :][:, :Ho, :Wo, :]
    x3 = x[:, 1::2, 1::2, :][:, :Ho, :Wo, :]
    m = jnp.concatenate([x0, x1, x2, x3], axis=-1)
    mean = jnp.mean(m, axis=-1, keepdims=True)
    var = jnp.mean((m - mean) ** 2, axis=-1, keepdims=True)
    y = (m - mean) / jnp.sqrt(var + eps) * gamma + beta
    return jnp.einsum("bhwk,nk->bhwn", y, weight)


if __name__ == "__main__":
    key = jax.random.PRNGKey(0)
    B, H, W, C = 2, 16, 16, 8      # dim = 8 -> 4*dim = 32, 2*dim = 16

    kx, kw, kg, kb = jax.random.split(key, 4)
    x = jax.random.normal(kx, (B, H, W, C), dtype=jnp.float32)
    weight = 0.05 * jax.random.normal(kw, (2 * C, 4 * C), dtype=jnp.float32)
    gamma = 1.0 + 0.1 * jax.random.normal(kg, (4 * C,), dtype=jnp.float32)
    beta = 0.1 * jax.random.normal(kb, (4 * C,), dtype=jnp.float32)

    ref = _reference(x, gamma, beta, weight)

    # Exact-precision run (f32 MXU operands): tight check of merge + LN + matmul.
    out_f32 = jax.block_until_ready(
        patch_merging_2d(x, gamma, beta, weight, mxu_dtype=jnp.float32))
    assert out_f32.shape == (B, H // 2, W // 2, 2 * C), out_f32.shape
    assert jnp.allclose(out_f32, ref, atol=1e-4, rtol=1e-4), "f32 mismatch vs reference"

    # Default (production) run with bf16 MXU operands: looser tolerance.
    out_bf = jax.block_until_ready(patch_merging_2d(x, gamma, beta, weight))
    assert out_bf.shape == (B, H // 2, W // 2, 2 * C), out_bf.shape
    assert jnp.allclose(out_bf, ref, atol=3e-2, rtol=3e-2), "bf16 mismatch vs reference"

    print("KERNEL_OK")
</pallas_src>

<mosaic_0001>
module attributes {stable_mosaic.version = 11 : i64} {
  func.func @_merge_ln_reduce_kernel(%arg0: i32, %arg1: memref<4x1x8x16xf32, #tpu.memory_space<vmem>>, %arg2: memref<4x1x8x16xf32, #tpu.memory_space<vmem>>, %arg3: memref<2x16x16xf32, #tpu.memory_space<vmem>>, %arg4: memref<1x16xf32, #tpu.memory_space<vmem>>, %arg5: memref<32x16xf32, #tpu.memory_space<vmem>>) attributes {dimension_semantics = [#tpu.dimension_semantics<parallel>], iteration_bounds = array<i64: 4>, scalar_prefetch = 0 : i64, scratch_operands = 0 : i64, tpu.core_type = #tpu.core_type<tc>, window_params = [{transform_indices = @transform_0, window_bounds = array<i64: 4, 1, 8, 16>}, {transform_indices = @transform_1, window_bounds = array<i64: 4, 1, 8, 16>}, {pipeline_mode = #tpu.pipeline_mode<synchronous>, transform_indices = @transform_2, window_bounds = array<i64: 2, 16, 16>}, {pipeline_mode = #tpu.pipeline_mode<synchronous>, transform_indices = @transform_3, window_bounds = array<i64: 1, 16>}, {transform_indices = @transform_4, window_bounds = array<i64: 32, 16>}]} {
    %c0 = arith.constant 0 : index
    %c0_0 = arith.constant 0 : index
    %c0_1 = arith.constant 0 : index
    %c0_2 = arith.constant 0 : index
    %0 = vector.load %arg1[%c0, %c0_0, %c0_1, %c0_2] : memref<4x1x8x16xf32, #tpu.memory_space<vmem>>, vector<4x1x8x16xf32>
    %1 = vector.shape_cast %0 : vector<4x1x8x16xf32> to vector<4x8x16xf32>
    %2 = vector.shape_cast %1 : vector<4x8x16xf32> to vector<32x16xf32>
    %c0_3 = arith.constant 0 : index
    %c0_4 = arith.constant 0 : index
    %c0_5 = arith.constant 0 : index
    %c0_6 = arith.constant 0 : index
    %3 = vector.load %arg2[%c0_3, %c0_4, %c0_5, %c0_6] : memref<4x1x8x16xf32, #tpu.memory_space<vmem>>, vector<4x1x8x16xf32>
    %4 = vector.shape_cast %3 : vector<4x1x8x16xf32> to vector<4x8x16xf32>
    %5 = vector.shape_cast %4 : vector<4x8x16xf32> to vector<32x16xf32>
    %cst = arith.constant dense<0.000000e+00> : vector<32xf32>
    %6 = vector.multi_reduction <add>, %2, %cst [1] : vector<32x16xf32> to vector<32xf32>
    %7 = vector.shape_cast %6 : vector<32xf32> to vector<32x1xf32>
    %cst_7 = arith.constant dense<0.000000e+00> : vector<32xf32>
    %8 = vector.multi_reduction <add>, %5, %cst_7 [1] : vector<32x16xf32> to vector<32xf32>
    %9 = vector.shape_cast %8 : vector<32xf32> to vector<32x1xf32>
    %10 = arith.addf %7, %9 : vector<32x1xf32>
    %cst_8 = arith.constant 3.125000e-02 : f32
    %11 = vector.broadcast %cst_8 : f32 to vector<32x1xf32>
    %12 = arith.mulf %10, %11 : vector<32x1xf32>
    %13 = vector.broadcast %12 : vector<32x1xf32> to vector<32x16xf32>
    %14 = arith.subf %2, %13 : vector<32x16xf32>
    %15 = vector.broadcast %12 : vector<32x1xf32> to vector<32x16xf32>
    %16 = arith.subf %5, %15 : vector<32x16xf32>
    %17 = arith.mulf %14, %14 : vector<32x16xf32>
    %cst_9 = arith.constant dense<0.000000e+00> : vector<32xf32>
    %18 = vector.multi_reduction <add>, %17, %cst_9 [1] : vector<32x16xf32> to vector<32xf32>
    %19 = vector.shape_cast %18 : vector<32xf32> to vector<32x1xf32>
    %20 = arith.mulf %16, %16 : vector<32x16xf32>
    %cst_10 = arith.constant dense<0.000000e+00> : vector<32xf32>
    %21 = vector.multi_reduction <add>, %20, %cst_10 [1] : vector<32x16xf32> to vector<32xf32>
    %22 = vector.shape_cast %21 : vector<32xf32> to vector<32x1xf32>
    %23 = arith.addf %19, %22 : vector<32x1xf32>
    %cst_11 = arith.constant 3.125000e-02 : f32
    %24 = vector.broadcast %cst_11 : f32 to vector<32x1xf32>
    %25 = arith.mulf %23, %24 : vector<32x1xf32>
    %cst_12 = arith.constant 9.99999974E-6 : f32
    %26 = vector.broadcast %cst_12 : f32 to vector<32x1xf32>
    %27 = arith.addf %25, %26 : vector<32x1xf32>
    %28 = math.rsqrt %27 : vector<32x1xf32>
    %29 = vector.broadcast %28 : vector<32x1xf32> to vector<32x16xf32>
    %30 = arith.mulf %14, %29 : vector<32x16xf32>
    %31 = vector.broadcast %28 : vector<32x1xf32> to vector<32x16xf32>
    %32 = arith.mulf %16, %31 : vector<32x16xf32>
    %c0_13 = arith.constant 0 : index
    %c0_14 = arith.constant 0 : index
    %c0_15 = arith.constant 0 : index
    %33 = vector.load %arg3[%c0_13, %c0_14, %c0_15] : memref<2x16x16xf32, #tpu.memory_space<vmem>>, vector<1x16x16xf32>
    %34 = vector.shape_cast %33 : vector<1x16x16xf32> to vector<16x16xf32>
    %cst_16 = arith.constant dense<0.000000e+00> : vector<32x16xf32>
    %35 = tpu.matmul %30, %34, %cst_16 {dimension_numbers = #tpu.dot_dimension_numbers<[1], [0], [0], [1], [0, 0, 1, 1], [], []>} : vector<32x16xf32>, vector<16x16xf32>, vector<32x16xf32> -> vector<32x16xf32>
    %c1 = arith.constant 1 : index
    %c0_17 = arith.constant 0 : index
    %c0_18 = arith.constant 0 : index
    %36 = vector.load %arg3[%c1, %c0_17, %c0_18] : memref<2x16x16xf32, #tpu.memory_space<vmem>>, vector<1x16x16xf32>
    %37 = vector.shape_cast %36 : vector<1x16x16xf32> to vector<16x16xf32>
    %cst_19 = arith.constant dense<0.000000e+00> : vector<32x16xf32>
    %38 = tpu.matmul %32, %37, %cst_19 {dimension_numbers = #tpu.dot_dimension_numbers<[1], [0], [0], [1], [0, 0, 1, 1], [], []>} : vector<32x16xf32>, vector<16x16xf32>, vector<32x16xf32> -> vector<32x16xf32>
    %39 = arith.addf %35, %38 : vector<32x16xf32>
    %c0_20 = arith.constant 0 : index
    %c0_21 = arith.constant 0 : index
    %40 = vector.load %arg4[%c0_20, %c0_21] : memref<1x16xf32, #tpu.memory_space<vmem>>, vector<1x16xf32>
    %41 = vector.broadcast %40 : vector<1x16xf32> to vector<32x16xf32>
    %42 = arith.addf %39, %41 : vector<32x16xf32>
    %c0_22 = arith.constant 0 : index
    %c0_23 = arith.constant 0 : index
    %43 = vector.load %arg5[%c0_22, %c0_23] : memref<32x16xf32, #tpu.memory_space<vmem>>, vector<32x16xf32>
    tpu.vector_store %arg5[%c0_22, %c0_23], %42 {strides = array<i32>} : memref<32x16xf32, #tpu.memory_space<vmem>>, vector<32x16xf32>,
    return
  }
  func.func @transform_0(%arg0: i32) -> (i32, i32, i32, i32) {
    %c0_i32 = arith.constant 0 : i32
    %c0_i32_0 = arith.constant 0 : i32
    %c0_i32_1 = arith.constant 0 : i32
    %c0_i32_2 = arith.constant 0 : i32
    return %arg0, %c0_i32, %c0_i32_0, %c0_i32_1 : i32, i32, i32, i32
  }
  func.func @transform_1(%arg0: i32) -> (i32, i32, i32, i32) {
    %c1_i32 = arith.constant 1 : i32
    %c0_i32 = arith.constant 0 : i32
    %c0_i32_0 = arith.constant 0 : i32
    %c0_i32_1 = arith.constant 0 : i32
    return %arg0, %c1_i32, %c0_i32, %c0_i32_0 : i32, i32, i32, i32
  }
  func.func @transform_2(%arg0: i32) -> (i32, i32, i32) {
    %c0_i32 = arith.constant 0 : i32
    %c0_i32_0 = arith.constant 0 : i32
    %c0_i32_1 = arith.constant 0 : i32
    %c0_i32_2 = arith.constant 0 : i32
    return %c0_i32, %c0_i32_0, %c0_i32_1 : i32, i32, i32
  }
  func.func @transform_3(%arg0: i32) -> (i32, i32) {
    %c0_i32 = arith.constant 0 : i32
    %c0_i32_0 = arith.constant 0 : i32
    %c0_i32_1 = arith.constant 0 : i32
    return %c0_i32, %c0_i32_0 : i32, i32
  }
  func.func @transform_4(%arg0: i32) -> (i32, i32) {
    %c0_i32 = arith.constant 0 : i32
    %c0_i32_0 = arith.constant 0 : i32
    return %arg0, %c0_i32 : i32, i32
  }
}

</mosaic_0001>

<bundles_post_ra>
// kernel: tpu_custom_call.1
= control target key start
LH: loop header
LB: loop body
LE: loop exit
PB: predicated region body
PF: predicated region fallthrough
CT: control target
= control target key end

     0   :  { %s1097_s0 = inlined_call_operand.hbm [shape: f32[16,2,8,16], index: 0, kind: input, shape index: {}]   ;;  %s1098_s1 = inlined_call_operand.hbm [shape: f32[16,2,8,16], index: 1, kind: input, shape index: {}]   ;;  %s1099_s2 = inlined_call_operand.hbm [shape: f32[2,16,16], index: 2, kind: input, shape index: {}]   ;;  %s1100_s3 = inlined_call_operand.vmem [shape: f32[1,16], index: 3, kind: input, shape index: {}]   ;;  %s1101_s4 = inlined_call_operand.vmem [shape: f32[128,16], index: 4, kind: output, shape index: {}]  }
   0x1   :  { %1102 = sst [smem:[#allocation10_spill]] %s1097_s0 }
   0x2   :  { %9 = vsyncpa [#allocation3], 0 }
   0x3   :  { %11 = vsyncpa [#allocation3 + $0x1], 0 }
   0x4   :  { %12 = vsyncpa [#allocation5], 0 }
   0x5   :  { %14 = vsyncpa [#allocation5 + $0x1], 0  ;;  %s890_s15 = smov 0   ;;  %s892_s16 = smov 0  }
   0x6   :  { %s894_s17 = smov 0   ;;  %s896_s18 = smov 0  }
   0x7 LB: > { %s909_s19 = sadd.s32 4294967295, %s859_s18   ;;  %p40_p0 = scmp.ne.s32.totalorder %s851_s16, %s847_s15  ;;  %s859_s18 = sphi %s896_s18, %s1110_s18   ;;  %s855_s17 = sphi %s894_s17, %s1109_s17   ;;  %s851_s16 = sphi %s892_s16, %s1108_s16   ;;  %s847_s15 = sphi %s890_s15, %s1107_s15  }
   0x8   : > { %p41_p1 = scmp.eq.s32.totalorder %s909_s19, 0  ;;  %p627_p2 = scmp.ge.s32.totalorder %s859_s18, 1 }
   0x9   : > { %p145_p3 = scmp.lt.s32.totalorder %s859_s18, 5  ;;  %s156_s23 = sshll.u32 %s1099_s2, 4  ;;  %s157_s23 = int_to_ptr.hbm [resolvable:$true] %s156_s23 }
   0xa   : > { %p917_p4 = por %p41_p1, %p40_p0  ;;  %s861_s25 = smov [#allocation6]  }
   0xb   : > { %p924_p5 = pnand %p627_p2, %p145_p3  ;;  %s158_s26 = sshll.u32 %s861_s25, 4  ;;  %s159_s26 = int_to_ptr.vmem [resolvable:$true] %s158_s26 }
   0xc   : > { %s933_s27 = sadd.s32 1, %s859_s18   ;;  %s862_s28 = smov 128  }
   0xd   : > { %p668_p6 = pneg %p924_p5  ;;  %s863_s29 = smov 8  }
   0xe   : > { %s24_s30 = ssub.s32 %s859_s18, %s933_s27  ;;  %s27_s5 = sadd.s32 1, %s855_s17 }
   0xf   : > { %p669_p7 = pnand %p668_p6, %p41_p1  ;;  %p25_p8 = scmp.eq.s32.totalorder %s24_s30, 0 }
  0x10   : > { %p34_p9 = scmp.ne.s32.totalorder %s855_s17, %s851_s16  ;;  %p35_p10 = scmp.eq.s32.totalorder %s859_s18, 0 }
  0x11   : > { %671 = dma.hbm_to_vmem [thread:$0]  (!%p669_p7), %s157_s23, 512, %s159_s26, [#allocation5], %s862_s28, %s862_s28, %s863_s29  }
  0x12   : > { %p680_p11 = scmp.lt.s32.totalorder %s859_s18, 4  ;;  %p36_p12 = por %p35_p10, %p34_p9 }
  0x13   : > { %s946_s6 = scalar_select %p25_p8, %s855_s17, %s27_s5  }
  0x14   : > { %s175_s7 = sand.u32 1, %s855_s17   ;;  %s654_s9 = sshll.u32 %s859_s18, 6 }
  0x15   : > { %s949_s8 = sshll.u32 %s175_s7, 5  ;;  %s1105_s0 = sld [smem:[#allocation10_spill]] }
  0x16   : > { %s179_s13 = scalar_lea.vmem [#allocation2], %s949_s8  ;;  %p956_p13 = pnand %p680_p11, %p36_p12 }
  0x17   : > { %s188_s14 = sshll.u32 %s179_s13, 4  ;;  %s562_s25 = scalar_lea.hbm %s1098_s1, %s654_s9  ;;  %s189_s14 = int_to_ptr.vmem [resolvable:$true] %s188_s14 }
  0x18   : > { %s176_s26 = scalar_lea.sflag [#allocation3], %s175_s7  ;;  %p761_p2 = pneg %p956_p13 }
  0x1b   : > { %s185_s12 = scalar_lea.hbm %s1105_s0, %s654_s9 }
  0x1c   : > { %s186_s15 = sshll.u32 %s185_s12, 4  ;;  %s764_s12 = scalar_lea.hbm %s1105_s0, 256  ;;  %s187_s15 = int_to_ptr.hbm [resolvable:$true] %s186_s15 }
  0x1d   : > { %s757_s30 = sshra.s32 %s187_s15, 4  ;;  %s758_s30 = int_to_ptr.hbm [resolvable:$true] %s757_s30 }
  0x1e   : > { %s759_s5 = scalar_lea.hbm %s758_s30, 32  ;;  %p765_p7 = scmp.lt.s32.totalorder %s758_s30, %s1105_s0 }
  0x1f   : > { %p760_p0 = scmp.ne.s32.totalorder %s758_s30, %s759_s5  ;;  %p766_p8 = scmp.lt.s32.totalorder %s764_s12, %s759_s5 }
  0x21   : > { %p762_p3 = pnand %p761_p2, %p760_p0  ;;  %p767_p9 = por %p766_p8, %p765_p7 }
  0x23   : > { %p763_p6 = pneg %p762_p3 }
  0x25   : > { %p768_p10 = pnand %p767_p9, %p763_p6 }
  0x27   : > { %771 = shalt.err (!%p768_p10)
}
  0x28   : > { %s864_s7 = smov 256   ;;  %s563_s9 = scalar_lea.hbm %s562_s25, 8 }
  0x29   : > { %675 = dma.hbm_to_vmem [thread:$0]  (!%p956_p13), %s187_s15, 512, %s189_s14, %s176_s26, %s864_s7, %s862_s28, %s863_s29  }
  0x2a   : > { %s202_s23 = scalar_lea.vmem [#allocation4], %s949_s8  ;;  %s210_s11 = sshll.u32 %s563_s9, 4  ;;  %s211_s11 = int_to_ptr.hbm [resolvable:$true] %s210_s11 }
  0x2b   : > { %s212_s10 = sshll.u32 %s202_s23, 4  ;;  %s198_s30 = sand.u32 1, %s859_s18   ;;  %s213_s10 = int_to_ptr.vmem [resolvable:$true] %s212_s10 }
  0x2c   : > { %s199_s5 = scalar_lea.sflag [#allocation5], %s198_s30  ;;  %s787_s12 = sshra.s32 %s211_s11, 4  ;;  %s788_s12 = int_to_ptr.hbm [resolvable:$true] %s787_s12 }
  0x2d   : > { %s789_s13 = scalar_lea.hbm %s788_s12, 32  ;;  %s794_s14 = scalar_lea.hbm %s1098_s1, 256 }
  0x2e   : > { %p790_p11 = scmp.ne.s32.totalorder %s788_s12, %s789_s13  ;;  %p795_p3 = scmp.lt.s32.totalorder %s788_s12, %s1098_s1 }
  0x2f   : > { %p796_p6 = scmp.lt.s32.totalorder %s794_s14, %s789_s13 }
  0x30   : > { %p792_p12 = pnand %p790_p11, %p761_p2 }
  0x31   : > { %p797_p7 = por %p796_p6, %p795_p3 }
  0x32   : > { %p793_p0 = pneg %p792_p12 }
  0x34   : > { %p798_p8 = pnand %p797_p7, %p793_p0 }
  0x36   : > { %801 = shalt.err (!%p798_p8)
}
  0x37   : > { %678 = dma.hbm_to_vmem [thread:$0]  (!%p956_p13), %s211_s11, 512, %s213_s10, %s199_s5, %s864_s7, %s862_s28, %s863_s29  }
  0x38   : > { %224 = sbr.rel (%p924_p5) target bundleno = 491 (0x1eb), region = 36  ;;  %s226_s0 = sand.u32 (!%p924_p5), 1, %s851_s16  }
  0x39   : > { %s638_s18 = sshll.u32 (!%p924_p5), %s226_s0, 5  ;;  %s227_s25 = scalar_lea.sflag (!%p924_p5), [#allocation3], %s226_s0 }
  0x3a   : > { %s230_s26 = scalar_lea.vmem (!%p924_p5), [#allocation2], %s638_s18 }
  0x3d   : > { %834 = dma.done.wait (%p917_p4), %s227_s25, 512  }
  0x3e   : > { %836 = vsyncadd (%p917_p4), %s227_s25, 4294966784  ;;  %s236_s21 = sand.u32 1, %s909_s19   ;;  %s240_s23 = scalar_lea.vmem [#allocation4], %s638_s18 }
  0x3f   : > { %s237_s9 = scalar_lea.sflag [#allocation5], %s236_s21 }
  0x40   : > { %838 = dma.done.wait (%p917_p4), %s237_s9, 512  }
  0x41   : > { %840 = vsyncadd (%p917_p4), %s237_s9, 4294966784 }
  0x42   : > { %842 = dma.done.wait (%p41_p1), [#allocation5], 512  }
  0x43   : > { %844 = vsyncadd (%p41_p1), [#allocation5], 4294966784  ;;  %vm292_vm0 = vcmask 130048   ;;  %v287_v0 = vld [vmem:[%s230_s26 + $0x18] sm:$0xff]  ;;  %v286_v1 = vld [vmem:[%s230_s26 + $0x10] sm:$0xff]  ;;  %s641_s20 = sshll.u32 %s909_s19, 2 }
  0x44   : > { %v284_v2 = vld [vmem:[%s230_s26] sm:$0xff]  ;;  %v302_v3 = vsel %vm292_vm0, %v287_v0, 0.0  ;;  %v299_v4 = vsel %vm292_vm0, %v286_v1, 0.0  ;;  %v291_v6 = vld [vmem:[%s240_s23 + $0x18] sm:$0xff]  ;;  %v290_v7 = vld [vmem:[%s240_s23 + $0x10] sm:$0xff]  ;;  %p279_p1 = scmp.lt.s32.totalorder %s641_s20, 15 }
  0x45   : > { %v293_v5 = vsel %vm292_vm0, %v284_v2, 0.0  ;;  %303 = vadd.xlane.f32.xlu2 %v302_v3  ;;  %300 = vadd.xlane.f32.xlu0 %v299_v4  ;;  %v288_v8 = vld [vmem:[%s240_s23] sm:$0xff]  ;;  %v314_v9 = vsel %vm292_vm0, %v291_v6, 0.0  ;;  %v311_v10 = vsel %vm292_vm0, %v290_v7, 0.0  ;;  %v285_v12 = vld [vmem:[%s230_s26 + $0x8] sm:$0xff]  ;;  %v429_v56 = vld [vmem:[#allocation6 + $0x18] sm:$0xff] }
  0x46   : > { %294 = vadd.xlane.f32.xlu1 %v293_v5  ;;  %v305_v11 = vsel %vm292_vm0, %v288_v8, 0.0  ;;  %v289_v13 = vld [vmem:[%s240_s23 + $0x8] sm:$0xff]  ;;  %v296_v14 = vsel %vm292_vm0, %v285_v12, 0.0  ;;  %656 = vmatpush.msra.mxu2 %v429_v56  ;;  %v428_v58 = vld [vmem:[#allocation6 + $0x10] sm:$0xff]  ;;  %v425_v59 = vld [vmem:[#allocation6] sm:$0xff]  ;;  %s1112_s20 = smov (!%p279_p1, %s641_s20), 15 }
  0x47   : > { %v308_v15 = vsel %vm292_vm0, %v289_v13, 0.0  ;;  %v426_v57 = vld [vmem:[#allocation6 + $0x8] sm:$0xff]  ;;  %456 = vmatpush.msra.mxu0 %v429_v56  ;;  %s642_s24 = sshll.u32 %s1112_s20, 3 }
  0x48   : > { %658 = vmatpush.msra.mxu3 %v426_v57  ;;  %497 = vmatpush.msra.mxu1 %v426_v57  ;;  %s282_s11 = scalar_lea.vmem %s1101_s4, %s642_s24 }
  0x49   : > { %657 = vmatpush.msra.mxu2 %v428_v58  ;;  %457 = vmatpush.msra.mxu0 %v428_v58 }
  0x4a   : > { %659 = vmatpush.msra.mxu3 %v425_v59  ;;  %498 = vmatpush.msra.mxu1 %v425_v59 }
  0x4d   : > { %315 = vadd.xlane.f32.xlu2 %v314_v9  ;;  %312 = vadd.xlane.f32.xlu0 %v311_v10 }
  0x4e   : > { %306 = vadd.xlane.f32.xlu1 %v305_v11 }
  0x55   : > { %297 = vadd.xlane.f32.xlu0 %v296_v14 }
  0x56   : > { %309 = vadd.xlane.f32.xlu1 %v308_v15 }
  0xb8   : > { %v304_v16 = vpop.xlane.xlu2 %303  ;;  %v301_v17 = vpop.xlane.xlu0 %300 }
  0xb9   : > { %v295_v18 = vpop.xlane.xlu1 %294 }
  0xc0   : > { %v316_v19 = vpop.xlane.xlu2 %315  ;;  %v313_v20 = vpop.xlane.xlu0 %312 }
  0xc1   : > { %v320_v21 = vadd.f32 %v316_v19, %v304_v16  ;;  %v319_v22 = vadd.f32 %v313_v20, %v301_v17  ;;  %v307_v23 = vpop.xlane.xlu1 %306 }
  0xc2   : > { %v317_v24 = vadd.f32 %v307_v23, %v295_v18 }
  0xc3   : > { %v323_v25 = vmul.f32 0.03125, %v319_v22  ;;  %v324_v27 = vmul.f32 0.03125, %v320_v21 }
  0xc4   : > { %v321_v26 = vmul.f32 0.03125, %v317_v24 }
  0xc5   : > { %v1017_v28 = vsub.f32 %v286_v1, %v323_v25  ;;  %v1019_v29 = vsub.f32 %v290_v7, %v323_v25  ;;  %v1029_v35 = vsub.f32 %v287_v0, %v324_v27  ;;  %v1035_v40 = vsub.f32 %v291_v6, %v324_v27 }
  0xc6   : > { %v1021_v30 = vsub.f32 %v284_v2, %v321_v26  ;;  %v1031_v36 = vsub.f32 %v288_v8, %v321_v26 }
  0xc7   : > { %v335_v31 = vmul.f32 %v1017_v28, %v1017_v28  ;;  %v351_v32 = vmul.f32 %v1019_v29, %v1019_v29  ;;  %v336_v44 = vmul.f32 %v1029_v35, %v1029_v35  ;;  %v352_v46 = vmul.f32 %v1035_v40, %v1035_v40 }
  0xc8   : > { %v333_v33 = vmul.f32 %v1021_v30, %v1021_v30  ;;  %v298_v34 = vpop.xlane.xlu0 %297  ;;  %v349_v45 = vmul.f32 %v1031_v36, %v1031_v36 }
  0xc9   : > { %v343_v37 = vsel %vm292_vm0, %v335_v31, 0.0  ;;  %v359_v38 = vsel %vm292_vm0, %v351_v32, 0.0  ;;  %v310_v39 = vpop.xlane.xlu1 %309  ;;  %v346_v49 = vsel %vm292_vm0, %v336_v44, 0.0  ;;  %v362_v51 = vsel %vm292_vm0, %v352_v46, 0.0 }
  0xca   : > { %344 = vadd.xlane.f32.xlu2 %v343_v37  ;;  %360 = vadd.xlane.f32.xlu0 %v359_v38  ;;  %v337_v41 = vsel %vm292_vm0, %v333_v33, 0.0  ;;  %v318_v42 = vadd.f32 %v310_v39, %v298_v34  ;;  %v353_v50 = vsel %vm292_vm0, %v349_v45, 0.0 }
  0xcb   : > { %338 = vadd.xlane.f32.xlu1 %v337_v41 }
  0xcc   : > { %v322_v43 = vmul.f32 0.03125, %v318_v42 }
  0xce   : > { %v1044_v47 = vsub.f32 %v285_v12, %v322_v43  ;;  %v1046_v48 = vsub.f32 %v289_v13, %v322_v43 }
  0xd0   : > { %v350_v52 = vmul.f32 %v1046_v48, %v1046_v48  ;;  %v334_v53 = vmul.f32 %v1044_v47, %v1044_v47 }
  0xd2   : > { %347 = vadd.xlane.f32.xlu0 %v346_v49  ;;  %354 = vadd.xlane.f32.xlu2 %v353_v50  ;;  %v356_v54 = vsel %vm292_vm0, %v350_v52, 0.0  ;;  %v340_v55 = vsel %vm292_vm0, %v334_v53, 0.0 }
  0xd3   : > { %363 = vadd.xlane.f32.xlu1 %v362_v51 }
  0xda   : > { %357 = vadd.xlane.f32.xlu0 %v356_v54  ;;  %341 = vadd.xlane.f32.xlu2 %v340_v55 }
 0x13d   : > { %v345_v60 = vpop.xlane.xlu2 %344  ;;  %v361_v61 = vpop.xlane.xlu0 %360 }
 0x13e   : > { %v367_v62 = vadd.f32 %v361_v61, %v345_v60  ;;  %v339_v63 = vpop.xlane.xlu1 %338 }
 0x140   : > { %v371_v0 = vmul.f32 0.03125, %v367_v62 }
 0x142   : > { %v375_v1 = vadd.f32 1e-05, %v371_v0 }
 0x144   : > { %719 = vrsqrt.f32 %v375_v1  ;;  %vm403_vm2 = vweird.f32 %v375_v1 }
 0x145   : > { %v348_v2 = vpop.xlane.xlu0 %347  ;;  %v355_v3 = vpop.xlane.xlu2 %354 }
 0x146   : > { %v365_v4 = vadd.f32 %v355_v3, %v339_v63  ;;  %v364_v5 = vpop.xlane.xlu1 %363 }
 0x147   : > { %v368_v6 = vadd.f32 %v364_v5, %v348_v2 }
 0x148   : > { %v369_v7 = vmul.f32 0.03125, %v365_v4 }
 0x149   : > { %v372_v8 = vmul.f32 0.03125, %v368_v6 }
 0x14a   : > { %v720_v9 = vpop.eup %719  ;;  %v373_v10 = vadd.f32 1e-05, %v369_v7 }
 0x14b   : > { %v398_v11 = vmul.f32 %v720_v9, %v375_v1  ;;  %v376_v12 = vadd.f32 1e-05, %v372_v8  ;;  %vm404_vm1 = vweird.f32 %v720_v9 }
 0x14c   : > { %721 = vrsqrt.f32 %v373_v10  ;;  %vm405_vm3 = vmor %vm403_vm2, %vm404_vm1  ;;  %vm383_vm6 = vweird.f32 %v373_v10 }
 0x14d   : > { %v399_v13 = vmul.f32 %v720_v9, %v398_v11  ;;  %723 = vrsqrt.f32 %v376_v12  ;;  %v358_v14 = vpop.xlane.xlu0 %357  ;;  %v342_v15 = vpop.xlane.xlu2 %341  ;;  %vm413_vm8 = vweird.f32 %v376_v12 }
 0x14e   : > { %v366_v16 = vadd.f32 %v358_v14, %v342_v15 }
 0x14f   : > { %v400_v17 = vmul.f32 0.5, %v399_v13 }
 0x150   : > { %v370_v18 = vmul.f32 0.03125, %v366_v16 }
 0x151   : > { %v401_v19 = vsub.f32 1.5, %v400_v17 }
 0x152   : > { %v722_v20 = vpop.eup %721  ;;  %v374_v21 = vadd.f32 1e-05, %v370_v18 }
 0x153   : > { %v724_v22 = vpop.eup %723  ;;  %v378_v23 = vmul.f32 %v722_v20, %v373_v10  ;;  %v402_v24 = vmul.f32 %v720_v9, %v401_v19  ;;  %vm384_vm4 = vweird.f32 %v722_v20 }
 0x154   : > { %v408_v25 = vmul.f32 %v724_v22, %v376_v12  ;;  %725 = vrsqrt.f32 %v374_v21  ;;  %vm414_vm5 = vweird.f32 %v724_v22  ;;  %vm385_vm7 = vmor %vm383_vm6, %vm384_vm4  ;;  %vm393_vm11 = vweird.f32 %v374_v21 }
 0x155   : > { %v379_v26 = vmul.f32 %v722_v20, %v378_v23  ;;  %v406_v27 = vsel %vm405_vm3, %v720_v9, %v402_v24  ;;  %vm415_vm9 = vmor %vm413_vm8, %vm414_vm5 }
 0x156   : > { %v409_v31 = vmul.f32 %v724_v22, %v408_v25  ;;  %v423_v32 = vmul.f32 %v406_v27, %v1019_v29  ;;  %v419_v33 = vmul.f32 %v406_v27, %v1017_v28 }
 0x157   : > { %v380_v34 = vmul.f32 0.5, %v379_v26 }
 0x158   : > { %v410_v37 = vmul.f32 0.5, %v409_v31  ;;  %645 = vmatmul.msk.f32.vlgmr.msra.gmra.mxu2 %vm292_vm0, %v423_v32  ;;  %649 = vmatmul.msk.f32.vlgmr.msra.gmra.mxu3 %vm292_vm0, %v419_v33 }
 0x159   : > { %v381_v38 = vsub.f32 1.5, %v380_v34 }
 0x15a   : > { %v726_v39 = vpop.eup %725  ;;  %v411_v41 = vsub.f32 1.5, %v410_v37 }
 0x15b   : > { %v388_v42 = vmul.f32 %v726_v39, %v374_v21  ;;  %v382_v43 = vmul.f32 %v722_v20, %v381_v38  ;;  %vm394_vm10 = vweird.f32 %v726_v39 }
 0x15c   : > { %v412_v44 = vmul.f32 %v724_v22, %v411_v41  ;;  %vm395_vm12 = vmor %vm393_vm11, %vm394_vm10 }
 0x15d   : > { %v389_v29 = vmul.f32 %v726_v39, %v388_v42  ;;  %v386_v28 = vsel %vm385_vm7, %v722_v20, %v382_v43 }
 0x15e   : > { %v421_v45 = vmul.f32 %v386_v28, %v1031_v36  ;;  %v416_v46 = vsel %vm415_vm9, %v724_v22, %v412_v44  ;;  %v417_v49 = vmul.f32 %v386_v28, %v1021_v30 }
 0x15f   : > { %v390_v50 = vmul.f32 0.5, %v389_v29  ;;  %v424_v51 = vmul.f32 %v416_v46, %v1035_v40  ;;  %v420_v52 = vmul.f32 %v416_v46, %v1029_v35  ;;  %v718_v35 = vld [vmem:[%s1100_s3] ss:$0 sm:$0xff] }
 0x160   : > { %643 = vmatmul.msk.f32.vlgmr.msra.gmra.mxu0 %vm292_vm0, %v421_v45  ;;  %647 = vmatmul.msk.f32.vlgmr.msra.gmra.mxu1 %vm292_vm0, %v417_v49 }
 0x161   : > { %v391_v53 = vsub.f32 1.5, %v390_v50  ;;  %646 = vmatmul.msk.f32.gmra.mxu2 %vm292_vm0, %v424_v51  ;;  %650 = vmatmul.msk.f32.gmra.mxu3 %vm292_vm0, %v420_v52 }
 0x163   : > { %v392_v36 = vmul.f32 %v726_v39, %v391_v53 }
 0x165   : > { %v396_v30 = vsel %vm395_vm12, %v726_v39, %v392_v36 }
 0x166   : > { %v422_v54 = vmul.f32 %v396_v30, %v1046_v48  ;;  %v418_v40 = vmul.f32 %v396_v30, %v1044_v47 }
 0x168   : > { %644 = vmatmul.msk.f32.gmra.mxu0 %vm292_vm0, %v422_v54  ;;  %648 = vmatmul.msk.f32.gmra.mxu1 %vm292_vm0, %v418_v40 }
 0x1db   : > { %v465_v55 = vpop.f32.mrf.mxu2  ;;  %v506_v56 = vpop.f32.mrf.mxu3 }
 0x1dc   : > { %v507_v57 = vadd.f32 %v506_v56, %v465_v55 }
 0x1dd   : > { %v459_v47 = vpop.f32.mrf.mxu0  ;;  %v500_v48 = vpop.f32.mrf.mxu1 }
 0x1de   : > { %v518_v58 = vadd.f32 %v718_v35, %v507_v57  ;;  %v501_v59 = vadd.f32 %v500_v48, %v459_v47 }
 0x1e0   : > { %522 = vst.msk [vmem:[%s282_s11 + $0x10] sm:$0xff] %vm292_vm0, %v518_v58  ;;  %v516_v60 = vadd.f32 %v718_v35, %v501_v59 }
 0x1e2   : > { %520 = vst.msk [vmem:[%s282_s11] sm:$0xff] %vm292_vm0, %v516_v60 }
 0x1e4   : > { %v468_v61 = vpop.f32.mrf.mxu2  ;;  %v509_v62 = vpop.f32.mrf.mxu3 }
 0x1e5   : > { %v510_v63 = vadd.f32 %v509_v62, %v468_v61  ;;  %v462_v0 = vpop.f32.mrf.mxu0  ;;  %v503_v1 = vpop.f32.mrf.mxu1 }
 0x1e6   : > { %v504_v2 = vadd.f32 %v503_v1, %v462_v0 }
 0x1e7   : > { %v519_v3 = vadd.f32 %v718_v35, %v510_v63 }
 0x1e8   : > { %v517_v4 = vadd.f32 %v718_v35, %v504_v2 }
 0x1e9   : > { %523 = vst.msk [vmem:[%s282_s11 + $0x18] sm:$0xff] %vm292_vm0, %v519_v3 }
 0x1ea   : > { %521 = vst.msk [vmem:[%s282_s11 + $0x8] sm:$0xff] %vm292_vm0, %v517_v4 }
 0x1eb PF: > { %p17_p4 = scmp.ge.s32.totalorder %s933_s27, 6   ;;  %s1107_s15 = smov %s851_s16 }
 0x1ec   : > { %s1108_s16 = smov %s855_s17  ;;  %s1109_s17 = smov %s946_s6 }
 0x1ed   : > { %s1110_s18 = smov %s933_s27  ;;  %19 = sbr.rel (!%p17_p4) target bundleno = 7 (0x7), region = 94 }
 0x1f2   :  { %546 = vsyncpa [#allocation3], 1 }
 0x1f3   :  { %548 = vsyncpa [#allocation3 + $0x1], 1 }
 0x1f4   :  { %549 = vsyncpa [#allocation5], 1 }
 0x1f5   :  { %551 = vsyncpa [#allocation5 + $0x1], 1 }

</bundles_post_ra>
